<compile_context>
chip_gen: v7x
topology: tpu7x:2x2x1
jax: 0.10.0
libtpu: 0.0.40
codegen_flags: <defaults>
</compile_context>

<pallas_src>
import functools
from typing import NamedTuple, Tuple

import jax
import jax.numpy as jnp
from jax.experimental import pallas as pl
from jax.experimental.pallas import tpu as pltpu

LANE = 128      # lane width of a vreg (last dim)
SUBLANE = 8     # sublane width (second-to-last dim, f32)


def _round_up(x, m):
    return (x + m - 1) // m * m


def _cdiv(a, b):
    return -(-a // b)


def _pad2(a, rows, cols):
    """Zero-pad a 2-D array up to (rows, cols)."""
    return jnp.pad(a, ((0, rows - a.shape[0]), (0, cols - a.shape[1])))


def _device_kind():
    try:
        return jax.devices()[0].device_kind.lower()
    except Exception:
        return ""


def _num_tensorcores():
    # v7x has 2 TensorCores per chip; v5e/v6e have 1.
    return 2 if "v7" in _device_kind() else 1


def _default_compute_dtype():
    # bf16 operands on v6e/v7x (traffic-bound kernel); f32 elsewhere for bit-accuracy.
    kind = _device_kind()
    if "v6" in kind or "v7" in kind:
        return jnp.bfloat16
    return jnp.float32


class PreparedParams(NamedTuple):
    flat: Tuple[jax.Array, ...]   # w_in, b_in, [w_h, b_h]*n_hidden, w_out (padded/cast)
    n_hidden: int
    compute_dtype: object


def prepare_params(params, compute_dtype=None):
    """Pad/cast the weight pytree ONCE (hoisted out of the per-call hot path).

    Only the 128-wide intermediate dims are padded; the input K dim (w_in rows) and the
    output N dim (w_out cols) stay at their real sizes so x/out need no lane padding.
    Zero padding is exact: tanh(0 + 0) = 0, so padded lanes never contaminate real lanes.
    """
    if compute_dtype is None:
        compute_dtype = _default_compute_dtype()

    w_in, b_in = params["w_in"], params["b_in"]
    in_features = w_in.shape[0]
    h_pad = _round_up(w_in.shape[1], LANE)

    flat = [
        _pad2(w_in, in_features, h_pad).astype(compute_dtype),   # (in, 128): K stays real
        _pad2(b_in, 1, h_pad).astype(jnp.float32),                # biases stay f32
    ]
    prev_pad = h_pad
    for w, b in params["hidden"]:
        cur_pad = _round_up(w.shape[1], LANE)
        flat.append(_pad2(w, prev_pad, cur_pad).astype(compute_dtype))
        flat.append(_pad2(b, 1, cur_pad).astype(jnp.float32))
        prev_pad = cur_pad
    w_out = params["w_out"]
    flat.append(_pad2(w_out, prev_pad, w_out.shape[1]).astype(compute_dtype))  # (128, out): N stays real

    flat = tuple(jax.device_put(p) for p in flat)
    return PreparedParams(flat, len(params["hidden"]), compute_dtype)


def make_mlp_kernel(n_hidden):
    """Fused MLP kernel.

    Ref order: x, w_in, b_in, [w_h_i, b_h_i] * n_hidden, w_out, out.
    x/out are (TB, real_feature) batch tiles; weights/biases are resident in VMEM (constant
    index_map -> DMA'd once across batch tiles).  Matmuls accumulate in f32 on the MXU;
    bias add and tanh run in f32 on the VPU/EUP.
    """

    def kernel(*refs):
        x_ref = refs[0]
        w_in_ref = refs[1]
        b_in_ref = refs[2]

        # input layer: tanh(x @ W_in + b_in)
        h = jnp.tanh(
            jnp.dot(x_ref[...], w_in_ref[...], preferred_element_type=jnp.float32)
            + b_in_ref[...]
        )

        idx = 3
        for _ in range(n_hidden):
            w_ref = refs[idx]
            b_ref = refs[idx + 1]
            idx += 2
            # hidden layer: tanh(h @ W + b); dropout is identity in eval mode
            h = jnp.tanh(
                jnp.dot(h.astype(w_ref.dtype), w_ref[...],
                        preferred_element_type=jnp.float32)
                + b_ref[...]
            )

        w_out_ref = refs[idx]
        out_ref = refs[idx + 1]
        # output layer: bias-free linear, stored at the real (unpadded) output width
        out_ref[...] = jnp.dot(
            h.astype(w_out_ref.dtype), w_out_ref[...],
            preferred_element_type=jnp.float32
        ).astype(out_ref.dtype)

    return kernel


@functools.partial(jax.jit, static_argnames=("n_hidden", "tb", "n_tiles", "compute_dtype"))
def _padded_forward(x, flat_params, *, n_hidden, tb, n_tiles, compute_dtype):
    batch, in_features = x.shape
    out_features = flat_params[-1].shape[1]
    padded_batch = tb * n_tiles

    # Row-pad + cast fused under jit (no eager HBM materialization pass).
    x_pad = jnp.pad(x, ((0, padded_batch - batch), (0, 0))).astype(compute_dtype)

    kernel = make_mlp_kernel(n_hidden)

    # x / out: batch-tiled at real feature width, double-buffered by the Pallas pipeline.
    x_spec = pl.BlockSpec((tb, in_features), lambda i: (i, 0))
    out_spec = pl.BlockSpec((tb, out_features), lambda i: (i, 0))
    # weights / biases: constant block index -> DMA'd once, resident across batch tiles.
    param_specs = [pl.BlockSpec(p.shape, lambda i: (0, 0)) for p in flat_params]

    return pl.pallas_call(
        kernel,
        out_shape=jax.ShapeDtypeStruct((padded_batch, out_features), jnp.float32),
        grid=(n_tiles,),
        in_specs=[x_spec] + list(param_specs),
        out_specs=out_spec,
        compiler_params=pltpu.CompilerParams(
            # batch tiles are independent -> shard across the 2 TensorCores on v7x
            dimension_semantics=("parallel",),
        ),
    )(x_pad, *flat_params)


def custom_resnet_apply(x, prepared: PreparedParams, *, max_tile_rows=None):
    """Choose the batch tiling, run the fused kernel, slice back the valid rows."""
    batch = x.shape[0]
    out_features = prepared.flat[-1].shape[1]
    compute_dtype = prepared.compute_dtype

    if max_tile_rows is None:
        # VMEM (not vregs) is the limit; these caps leave large headroom even on v7x's 64 MiB.
        max_tile_rows = 4096 if compute_dtype == jnp.bfloat16 else 2048

    num_tc = _num_tensorcores()
    n_tiles = max(1, _cdiv(batch, max_tile_rows))
    if num_tc > 1 and batch > SUBLANE:
        # v7x: make the grid a multiple of 2 so both TensorCores get real work.
        n_tiles = _round_up(n_tiles, num_tc)
    tb = _round_up(_cdiv(batch, n_tiles), SUBLANE)   # < 8 padded rows per tile

    y_pad = _padded_forward(x, prepared.flat, n_hidden=prepared.n_hidden,
                            tb=tb, n_tiles=n_tiles, compute_dtype=compute_dtype)
    return y_pad[:batch, :out_features]


def init_params(layers, key):
    """Deterministic init mimicking PyTorch nn.Linear default (U(-1/sqrt(fan_in), 1/sqrt(fan_in)))."""
    params = {}
    n_hidden = len(layers) - 3  # hidden layers: i in range(1, len(layers)-2)

    def linear_init(key, fan_in, fan_out, bias):
        kw, kb = jax.random.split(key)
        bound = 1.0 / jnp.sqrt(jnp.float32(fan_in))
        # stored already transposed: (in_features, out_features)
        w = jax.random.uniform(kw, (fan_in, fan_out), jnp.float32, -bound, bound)
        b = None
        if bias:
            b = jax.random.uniform(kb, (1, fan_out), jnp.float32, -bound, bound)
        return w, b

    keys = jax.random.split(key, n_hidden + 2)
    params["w_in"], params["b_in"] = linear_init(keys[0], layers[0], layers[1], True)
    params["hidden"] = []
    for i in range(1, len(layers) - 2):
        w, b = linear_init(keys[i], layers[i], layers[i + 1], True)
        params["hidden"].append((w, b))
    params["w_out"], _ = linear_init(keys[-1], layers[-2], layers[-1], False)
    return params


def reference_forward(x, params):
    """Plain-JAX reference (eval mode: dropout = identity)."""
    h = jnp.tanh(x @ params["w_in"] + params["b_in"])
    for w, b in params["hidden"]:
        h = jnp.tanh(h @ w + b)
    return h @ params["w_out"]


if __name__ == "__main__":
    # layers = [in, h1, h2, h3, out]  ->  input layer, 2 hidden layers, output layer
    layers = [8, 32, 32, 32, 4]

    key = jax.random.PRNGKey(0)
    key_x, key_x2, key_p = jax.random.split(key, 3)
    params = init_params(layers, key_p)

    # Exact (f32) path — prepared once, reused across calls.
    prepared_f32 = prepare_params(params, compute_dtype=jnp.float32)

    # Small batch (original harness size): single tile, unpadded x/out widths.
    x_small = jax.random.normal(key_x, (8, layers[0]), dtype=jnp.float32)
    out_small = jax.block_until_ready(custom_resnet_apply(x_small, prepared_f32))
    ref_small = reference_forward(x_small, params)
    assert out_small.shape == (8, layers[-1]), out_small.shape
    assert jnp.allclose(out_small, ref_small, atol=1e-5, rtol=1e-5), "small-batch mismatch"

    # Larger batch: default tiling (1 tile on v5e/v6e, 2 on v7x), tight tolerance.
    x_big = jax.random.normal(key_x2, (600, layers[0]), dtype=jnp.float32)
    out_big = jax.block_until_ready(custom_resnet_apply(x_big, prepared_f32))
    ref_big = reference_forward(x_big, params)
    assert out_big.shape == (600, layers[-1]), out_big.shape
    assert jnp.allclose(out_big, ref_big, atol=1e-5, rtol=1e-5), "big-batch mismatch"

    # Force a multi-tile grid (exercises the parallel batch axis + per-tile row padding).
    out_tiled = jax.block_until_ready(
        custom_resnet_apply(x_big, prepared_f32, max_tile_rows=256))
    assert out_tiled.shape == (600, layers[-1]), out_tiled.shape
    assert jnp.allclose(out_tiled, ref_big, atol=1e-5, rtol=1e-5), "tiled-batch mismatch"

    # Chip-default dtype path (bf16 on v6e/v7x, f32 on v5e): f32 accumulate + f32 tanh inside.
    prepared_auto = prepare_params(params)
    out_auto = jax.block_until_ready(custom_resnet_apply(x_big, prepared_auto))
    assert out_auto.shape == (600, layers[-1]), out_auto.shape
    assert jnp.allclose(out_auto, ref_big, atol=5e-2, rtol=5e-2), "auto-dtype path mismatch"

    print("KERNEL_OK")
</pallas_src>

<mosaic_0001>
module attributes {stable_mosaic.version = 11 : i64} {
  func.func @kernel(%arg0: i32, %arg1: memref<8x8xf32, #tpu.memory_space<vmem>>, %arg2: memref<8x128xf32, #tpu.memory_space<vmem>>, %arg3: memref<1x128xf32, #tpu.memory_space<vmem>>, %arg4: memref<128x128xf32, #tpu.memory_space<vmem>>, %arg5: memref<1x128xf32, #tpu.memory_space<vmem>>, %arg6: memref<128x128xf32, #tpu.memory_space<vmem>>, %arg7: memref<1x128xf32, #tpu.memory_space<vmem>>, %arg8: memref<128x4xf32, #tpu.memory_space<vmem>>, %arg9: memref<8x4xf32, #tpu.memory_space<vmem>>) attributes {dimension_semantics = [#tpu.dimension_semantics<parallel>], iteration_bounds = array<i64: 1>, scalar_prefetch = 0 : i64, scratch_operands = 0 : i64, tpu.core_type = #tpu.core_type<tc>, window_params = [{transform_indices = @transform_0, window_bounds = array<i64: 8, 8>}, {pipeline_mode = #tpu.pipeline_mode<synchronous>, transform_indices = @transform_1, window_bounds = array<i64: 8, 128>}, {pipeline_mode = #tpu.pipeline_mode<synchronous>, transform_indices = @transform_2, window_bounds = array<i64: 1, 128>}, {pipeline_mode = #tpu.pipeline_mode<synchronous>, transform_indices = @transform_3, window_bounds = array<i64: 128, 128>}, {pipeline_mode = #tpu.pipeline_mode<synchronous>, transform_indices = @transform_4, window_bounds = array<i64: 1, 128>}, {pipeline_mode = #tpu.pipeline_mode<synchronous>, transform_indices = @transform_5, window_bounds = array<i64: 128, 128>}, {pipeline_mode = #tpu.pipeline_mode<synchronous>, transform_indices = @transform_6, window_bounds = array<i64: 1, 128>}, {pipeline_mode = #tpu.pipeline_mode<synchronous>, transform_indices = @transform_7, window_bounds = array<i64: 128, 4>}, {transform_indices = @transform_8, window_bounds = array<i64: 8, 4>}]} {
    %c0 = arith.constant 0 : index
    %c0_0 = arith.constant 0 : index
    %0 = vector.load %arg1[%c0, %c0_0] : memref<8x8xf32, #tpu.memory_space<vmem>>, vector<8x8xf32>
    %c0_1 = arith.constant 0 : index
    %c0_2 = arith.constant 0 : index
    %1 = vector.load %arg2[%c0_1, %c0_2] : memref<8x128xf32, #tpu.memory_space<vmem>>, vector<8x128xf32>
    %cst = arith.constant dense<0.000000e+00> : vector<8x128xf32>
    %2 = tpu.matmul %0, %1, %cst {dimension_numbers = #tpu.dot_dimension_numbers<[1], [0], [0], [1], [0, 0, 1, 1], [], []>} : vector<8x8xf32>, vector<8x128xf32>, vector<8x128xf32> -> vector<8x128xf32>
    %c0_3 = arith.constant 0 : index
    %c0_4 = arith.constant 0 : index
    %3 = vector.load %arg3[%c0_3, %c0_4] : memref<1x128xf32, #tpu.memory_space<vmem>>, vector<1x128xf32>
    %4 = vector.broadcast %3 : vector<1x128xf32> to vector<8x128xf32>
    %5 = arith.addf %2, %4 : vector<8x128xf32>
    %6 = math.tanh %5 : vector<8x128xf32>
    %c0_5 = arith.constant 0 : index
    %c0_6 = arith.constant 0 : index
    %7 = vector.load %arg4[%c0_5, %c0_6] : memref<128x128xf32, #tpu.memory_space<vmem>>, vector<128x128xf32>
    %cst_7 = arith.constant dense<0.000000e+00> : vector<8x128xf32>
    %8 = tpu.matmul %6, %7, %cst_7 {dimension_numbers = #tpu.dot_dimension_numbers<[1], [0], [0], [1], [0, 0, 1, 1], [], []>} : vector<8x128xf32>, vector<128x128xf32>, vector<8x128xf32> -> vector<8x128xf32>
    %c0_8 = arith.constant 0 : index
    %c0_9 = arith.constant 0 : index
    %9 = vector.load %arg5[%c0_8, %c0_9] : memref<1x128xf32, #tpu.memory_space<vmem>>, vector<1x128xf32>
    %10 = vector.broadcast %9 : vector<1x128xf32> to vector<8x128xf32>
    %11 = arith.addf %8, %10 : vector<8x128xf32>
    %12 = math.tanh %11 : vector<8x128xf32>
    %c0_10 = arith.constant 0 : index
    %c0_11 = arith.constant 0 : index
    %13 = vector.load %arg6[%c0_10, %c0_11] : memref<128x128xf32, #tpu.memory_space<vmem>>, vector<128x128xf32>
    %cst_12 = arith.constant dense<0.000000e+00> : vector<8x128xf32>
    %14 = tpu.matmul %12, %13, %cst_12 {dimension_numbers = #tpu.dot_dimension_numbers<[1], [0], [0], [1], [0, 0, 1, 1], [], []>} : vector<8x128xf32>, vector<128x128xf32>, vector<8x128xf32> -> vector<8x128xf32>
    %c0_13 = arith.constant 0 : index
    %c0_14 = arith.constant 0 : index
    %15 = vector.load %arg7[%c0_13, %c0_14] : memref<1x128xf32, #tpu.memory_space<vmem>>, vector<1x128xf32>
    %16 = vector.broadcast %15 : vector<1x128xf32> to vector<8x128xf32>
    %17 = arith.addf %14, %16 : vector<8x128xf32>
    %18 = math.tanh %17 : vector<8x128xf32>
    %c0_15 = arith.constant 0 : index
    %c0_16 = arith.constant 0 : index
    %19 = vector.load %arg8[%c0_15, %c0_16] : memref<128x4xf32, #tpu.memory_space<vmem>>, vector<128x4xf32>
    %cst_17 = arith.constant dense<0.000000e+00> : vector<8x4xf32>
    %20 = tpu.matmul %18, %19, %cst_17 {dimension_numbers = #tpu.dot_dimension_numbers<[1], [0], [0], [1], [0, 0, 1, 1], [], []>} : vector<8x128xf32>, vector<128x4xf32>, vector<8x4xf32> -> vector<8x4xf32>
    %c0_18 = arith.constant 0 : index
    %c0_19 = arith.constant 0 : index
    %21 = vector.load %arg9[%c0_18, %c0_19] : memref<8x4xf32, #tpu.memory_space<vmem>>, vector<8x4xf32>
    tpu.vector_store %arg9[%c0_18, %c0_19], %20 {strides = array<i32>} : memref<8x4xf32, #tpu.memory_space<vmem>>, vector<8x4xf32>,
    return
  }
  func.func @transform_0(%arg0: i32) -> (i32, i32) {
    %c0_i32 = arith.constant 0 : i32
    %c0_i32_0 = arith.constant 0 : i32
    return %arg0, %c0_i32 : i32, i32
  }
  func.func @transform_1(%arg0: i32) -> (i32, i32) {
    %c0_i32 = arith.constant 0 : i32
    %c0_i32_0 = arith.constant 0 : i32
    %c0_i32_1 = arith.constant 0 : i32
    return %c0_i32, %c0_i32_0 : i32, i32
  }
  func.func @transform_2(%arg0: i32) -> (i32, i32) {
    %c0_i32 = arith.constant 0 : i32
    %c0_i32_0 = arith.constant 0 : i32
    %c0_i32_1 = arith.constant 0 : i32
    return %c0_i32, %c0_i32_0 : i32, i32
  }
  func.func @transform_3(%arg0: i32) -> (i32, i32) {
    %c0_i32 = arith.constant 0 : i32
    %c0_i32_0 = arith.constant 0 : i32
    %c0_i32_1 = arith.constant 0 : i32
    return %c0_i32, %c0_i32_0 : i32, i32
  }
  func.func @transform_4(%arg0: i32) -> (i32, i32) {
    %c0_i32 = arith.constant 0 : i32
    %c0_i32_0 = arith.constant 0 : i32
    %c0_i32_1 = arith.constant 0 : i32
    return %c0_i32, %c0_i32_0 : i32, i32
  }
  func.func @transform_5(%arg0: i32) -> (i32, i32) {
    %c0_i32 = arith.constant 0 : i32
    %c0_i32_0 = arith.constant 0 : i32
    %c0_i32_1 = arith.constant 0 : i32
    return %c0_i32, %c0_i32_0 : i32, i32
  }
  func.func @transform_6(%arg0: i32) -> (i32, i32) {
    %c0_i32 = arith.constant 0 : i32
    %c0_i32_0 = arith.constant 0 : i32
    %c0_i32_1 = arith.constant 0 : i32
    return %c0_i32, %c0_i32_0 : i32, i32
  }
  func.func @transform_7(%arg0: i32) -> (i32, i32) {
    %c0_i32 = arith.constant 0 : i32
    %c0_i32_0 = arith.constant 0 : i32
    %c0_i32_1 = arith.constant 0 : i32
    return %c0_i32, %c0_i32_0 : i32, i32
  }
  func.func @transform_8(%arg0: i32) -> (i32, i32) {
    %c0_i32 = arith.constant 0 : i32
    %c0_i32_0 = arith.constant 0 : i32
    return %arg0, %c0_i32 : i32, i32
  }
}

</mosaic_0001>

<bundles_post_ra>
// kernel: _padded_forward.1
= control target key start
LH: loop header
LB: loop body
LE: loop exit
PB: predicated region body
PF: predicated region fallthrough
CT: control target
= control target key end

     0   :  { %13 = vsyncpa [#allocation3], 0  ;;  %s948_s0 = inlined_call_operand.vmem [shape: f32[8,8], index: 0, kind: input, shape index: {}]   ;;  %s949_s1 = inlined_call_operand.hbm [shape: f32[8,128], index: 1, kind: input, shape index: {}]   ;;  %s950_s2 = inlined_call_operand.vmem [shape: f32[1,128], index: 2, kind: input, shape index: {}]   ;;  %s951_s3 = inlined_call_operand.vmem [shape: f32[128,128], index: 3, kind: input, shape index: {}]   ;;  %s952_s4 = inlined_call_operand.vmem [shape: f32[1,128], index: 4, kind: input, shape index: {}]   ;;  %s953_s5 = inlined_call_operand.hbm [shape: f32[128,128], index: 5, kind: input, shape index: {}]   ;;  %s954_s6 = inlined_call_operand.vmem [shape: f32[1,128], index: 6, kind: input, shape index: {}]   ;;  %s955_s7 = inlined_call_operand.vmem [shape: f32[128,4], index: 7, kind: input, shape index: {}]   ;;  %s956_s8 = inlined_call_operand.vmem [shape: f32[8,4], index: 8, kind: output, shape index: {}]  }
   0x1   :  { %14 = vsyncpa [#allocation5], 0  ;;  %s721_s27 = smov [#allocation2]   ;;  %s722_s29 = smov [#allocation4]  }
   0x2   :  { %s23_s28 = sshll.u32 %s721_s27, 4  ;;  %s38_s30 = sshll.u32 %s722_s29, 4  ;;  %s24_s28 = int_to_ptr.vmem [resolvable:$true] %s23_s28  ;;  %s773_s30 = int_to_ptr.vmem [resolvable:$true] %s38_s30 }
   0x3   :  { %s673_s11 = scalar_lea.hbm %s949_s1, 128 }
   0x4   :  { %p674_p0 = scmp.ne.s32.totalorder %s949_s1, %s673_s11  ;;  %p677_p1 = scmp.lt.u32.totalorder %s673_s11, %s949_s1 }
   0x6   :  { %p679_p2 = pnand %p677_p1, %p674_p0 }
   0x8   :  { %682 = shalt.err (!%p679_p2)
}
   0x9   :  { %s683_s16 = scalar_lea.vmem %s24_s28, 128  ;;  %p688_p4 = scmp.lt.s32.totalorder %s24_s28, %s24_s28 }
   0xa   :  { %p684_p3 = scmp.ne.s32.totalorder %s24_s28, %s683_s16  ;;  %p689_p5 = scmp.lt.s32.totalorder %s683_s16, %s683_s16 }
   0xc   :  { %p690_p6 = por %p689_p5, %p688_p4 }
   0xe   :  { %p691_p7 = pnand %p690_p6, %p684_p3 }
  0x10   :  { %694 = shalt.err (!%p691_p7)
}
  0x11   :  { %26 = dma.hbm_to_vmem [thread:$0]  %s949_s1, 128, %s24_s28, [#allocation3]  }
  0x12   :  { %s695_s21 = scalar_lea.hbm %s953_s5, 2048 }
  0x13   :  { %p696_p8 = scmp.ne.s32.totalorder %s953_s5, %s695_s21  ;;  %p699_p9 = scmp.lt.u32.totalorder %s695_s21, %s953_s5 }
  0x15   :  { %p701_p10 = pnand %p699_p9, %p696_p8 }
  0x17   :  { %704 = shalt.err (!%p701_p10)
}
  0x18   :  { %s705_s26 = scalar_lea.vmem %s773_s30, 2048  ;;  %p710_p12 = scmp.lt.s32.totalorder %s773_s30, %s773_s30 }
  0x19   :  { %p706_p11 = scmp.ne.s32.totalorder %s773_s30, %s705_s26  ;;  %p711_p13 = scmp.lt.s32.totalorder %s705_s26, %s705_s26 }
  0x1b   :  { %p712_p0 = por %p711_p13, %p710_p12 }
  0x1d   :  { %p713_p1 = pnand %p712_p0, %p706_p11 }
  0x1f   :  { %716 = shalt.err (!%p713_p1)
}
  0x20   :  { %s723_s1 = smov 128   ;;  %s724_s27 = smov 8  }
  0x21   :  { %44 = dma.hbm_to_vmem [thread:$0]  %s953_s5, 2048, %s773_s30, [#allocation5], %s723_s1, %s723_s1, %s724_s27  }
  0x22   :  { %717 = dma.done.wait [#allocation3], 128  }
  0x23   :  { %718 = vsyncadd [#allocation3], 4294967168 }
  0x24   :  { %719 = dma.done.wait [#allocation5], 2048  }
  0x25   :  { %720 = vsyncadd [#allocation5], 4294965248  ;;  %v725_v0 = vmov 0.0   ;;  %vm726_vm0 = vmmov 0   ;;  %v727_v1 = vmov 0.0|0.0   ;;  %vm64_vm1 = vcmask 64512  }
  0x26   :  { %478 = vmatprep.subr.mxu0 %v725_v0  ;;  %480 = vmatprep.mubr.msk.f32.mxu0 %vm726_vm0, %v725_v0  ;;  %v56_v2 = vld [vmem:[#allocation2] sm:$0xff]  ;;  %v140_v5 = vld [vmem:[%s951_s3 + $0x8] sm:$0xff]  ;;  %v141_v6 = vld [vmem:[%s951_s3 + $0x10] sm:$0xff]  ;;  %vm413_vm2 = vcmask 31744  }
  0x27   :  { %588 = vmatprep.subr.bf16.mxu1 %v727_v1  ;;  %515 = vmatprep.mubr.msk.f32.mxu1 %vm726_vm0, %v725_v0  ;;  %v55_v3 = vld [vmem:[%s948_s0] sm:$0xff]  ;;  %v142_v7 = vld [vmem:[%s951_s3 + $0x18] sm:$0xff]  ;;  %v144_v11 = vld [vmem:[%s951_s3 + $0x28] sm:$0xff] }
  0x28   :  { %v139_v4 = vld [vmem:[%s951_s3] sm:$0xff]  ;;  %479 = vmatpush3.msra.mxu0 %v56_v2  ;;  %v592_v9 = vpack.c.bf16 %v142_v7, %v141_v6  ;;  %v145_v13 = vld [vmem:[%s951_s3 + $0x30] sm:$0xff]  ;;  %v146_v14 = vld [vmem:[%s951_s3 + $0x38] sm:$0xff] }
  0x29   :  { %481 = vmatmul.mubr.msk.f32.vlgmr.msra.gmra.mrb[0].mxu0 %vm64_vm1, %v55_v3  ;;  %v589_v8 = vpack.c.bf16 %v140_v5, %v139_v4  ;;  %612 = vmatprep.subr.bf16.mxu0 %v727_v1  ;;  %v143_v10 = vld [vmem:[%s951_s3 + $0x20] sm:$0xff]  ;;  %v598_v15 = vpack.c.bf16 %v146_v14, %v145_v13  ;;  %v148_v17 = vld [vmem:[%s951_s3 + $0x48] sm:$0xff]  ;;  %v149_v19 = vld [vmem:[%s951_s3 + $0x50] sm:$0xff] }
  0x2a   :  { %550 = vmatprep.mubr.msk.f32.mxu0 %vm726_vm0, %v725_v0  ;;  %v595_v12 = vpack.c.bf16 %v144_v11, %v143_v10  ;;  %v147_v16 = vld [vmem:[%s951_s3 + $0x40] sm:$0xff]  ;;  %v150_v20 = vld [vmem:[%s951_s3 + $0x58] sm:$0xff]  ;;  %v152_v23 = vld [vmem:[%s951_s3 + $0x68] sm:$0xff] }
  0x2b   :  { %590 = vmatpush3.bf16.msra.mxu1 %v589_v8  ;;  %v601_v18 = vpack.c.bf16 %v148_v17, %v147_v16  ;;  %v604_v21 = vpack.c.bf16 %v150_v20, %v149_v19  ;;  %v151_v22 = vld [vmem:[%s951_s3 + $0x60] sm:$0xff]  ;;  %v153_v25 = vld [vmem:[%s951_s3 + $0x70] sm:$0xff]  ;;  %v154_v26 = vld [vmem:[%s951_s3 + $0x78] sm:$0xff] }
  0x2c   :  { %591 = vmatprep.subr.bf16.mxu1 %v727_v1  ;;  %v607_v24 = vpack.c.bf16 %v152_v23, %v151_v22  ;;  %v610_v27 = vpack.c.bf16 %v154_v26, %v153_v25  ;;  %v233_v28 = vld [vmem:[#allocation4] sm:$0xff]  ;;  %v234_v29 = vld [vmem:[#allocation4 + $0x8] sm:$0xff]  ;;  %v235_v30 = vld [vmem:[#allocation4 + $0x10] sm:$0xff] }
  0x2d   :  { %v613_v31 = vpack.c.bf16 %v234_v29, %v233_v28  ;;  %v236_v32 = vld [vmem:[#allocation4 + $0x18] sm:$0xff]  ;;  %v237_v34 = vld [vmem:[#allocation4 + $0x20] sm:$0xff]  ;;  %v238_v35 = vld [vmem:[#allocation4 + $0x28] sm:$0xff] }
  0x2e   :  { %v616_v33 = vpack.c.bf16 %v236_v32, %v235_v30  ;;  %v619_v36 = vpack.c.bf16 %v238_v35, %v237_v34  ;;  %v239_v37 = vld [vmem:[#allocation4 + $0x30] sm:$0xff]  ;;  %v240_v38 = vld [vmem:[#allocation4 + $0x38] sm:$0xff]  ;;  %v241_v40 = vld [vmem:[#allocation4 + $0x40] sm:$0xff] }
  0x2f   :  { %593 = vmatpush3.bf16.msra.mxu1 %v592_v9  ;;  %614 = vmatpush3.bf16.msra.mxu0 %v613_v31  ;;  %v622_v39 = vpack.c.bf16 %v240_v38, %v239_v37  ;;  %v242_v41 = vld [vmem:[#allocation4 + $0x48] sm:$0xff]  ;;  %v421_v43 = vld [vmem:[%s950_s2] ss:$0 sm:$0xff]  ;;  %v243_v48 = vld [vmem:[#allocation4 + $0x50] sm:$0xff] }
  0x30   :  { %594 = vmatprep.subr.bf16.mxu1 %v727_v1  ;;  %615 = vmatprep.subr.bf16.mxu0 %v727_v1  ;;  %v625_v42 = vpack.c.bf16 %v242_v41, %v241_v40  ;;  %v244_v49 = vld [vmem:[#allocation4 + $0x58] sm:$0xff]  ;;  %v245_v51 = vld [vmem:[#allocation4 + $0x60] sm:$0xff]  ;;  %v246_v52 = vld [vmem:[#allocation4 + $0x68] sm:$0xff] }
  0x31   :  { %v628_v50 = vpack.c.bf16 %v244_v49, %v243_v48  ;;  %v631_v53 = vpack.c.bf16 %v246_v52, %v245_v51  ;;  %v247_v54 = vld [vmem:[#allocation4 + $0x70] sm:$0xff]  ;;  %v248_v55 = vld [vmem:[#allocation4 + $0x78] sm:$0xff]  ;;  %v328_v58 = vld [vmem:[%s955_s7 + $0x8] sm:$0xff] }
  0x32   :  { %v634_v56 = vpack.c.bf16 %v248_v55, %v247_v54  ;;  %v327_v57 = vld [vmem:[%s955_s7] sm:$0xff]  ;;  %v329_v59 = vld [vmem:[%s955_s7 + $0x10] sm:$0xff]  ;;  %v330_v61 = vld [vmem:[%s955_s7 + $0x18] sm:$0xff] }
  0x33   :  { %596 = vmatpush3.bf16.msra.mxu1 %v595_v12  ;;  %617 = vmatpush3.bf16.msra.mxu0 %v616_v33  ;;  %v637_v60 = vpack.c.bf16 %v328_v58, %v327_v57  ;;  %v640_v62 = vpack.c.bf16 %v330_v61, %v329_v59  ;;  %v331_v63 = vld [vmem:[%s955_s7 + $0x20] sm:$0xff]  ;;  %v333_v3 = vld [vmem:[%s955_s7 + $0x30] sm:$0xff]  ;;  %v334_v4 = vld [vmem:[%s955_s7 + $0x38] sm:$0xff] }
  0x34   :  { %597 = vmatprep.subr.bf16.mxu1 %v727_v1  ;;  %618 = vmatprep.subr.bf16.mxu0 %v727_v1  ;;  %v646_v5 = vpack.c.bf16 %v334_v4, %v333_v3  ;;  %v335_v6 = vld [vmem:[%s955_s7 + $0x40] sm:$0xff]  ;;  %v336_v7 = vld [vmem:[%s955_s7 + $0x48] sm:$0xff]  ;;  %v337_v14 = vld [vmem:[%s955_s7 + $0x50] sm:$0xff] }
  0x35   :  { %v649_v8 = vpack.c.bf16 %v336_v7, %v335_v6  ;;  %v423_v9 = vld [vmem:[%s952_s4] ss:$0 sm:$0xff]  ;;  %v341_v20 = vld [vmem:[%s955_s7 + $0x70] sm:$0xff] }
  0x36   :  { %v339_v17 = vld [vmem:[%s955_s7 + $0x60] sm:$0xff] }
  0x37   :  { %599 = vmatpush3.bf16.msra.mxu1 %v598_v15  ;;  %620 = vmatpush3.bf16.msra.mxu0 %v619_v36  ;;  %v338_v15 = vld [vmem:[%s955_s7 + $0x58] sm:$0xff]  ;;  %v424_v23 = vld [vmem:[%s954_s6] ss:$0 sm:$0xff] }
  0x38   :  { %600 = vmatprep.subr.bf16.mxu1 %v727_v1  ;;  %621 = vmatprep.subr.bf16.mxu0 %v727_v1  ;;  %v652_v16 = vpack.c.bf16 %v338_v15, %v337_v14 }
  0x3b   :  { %602 = vmatpush3.bf16.msra.mxu1 %v601_v18  ;;  %623 = vmatpush3.bf16.msra.mxu0 %v622_v39  ;;  %v340_v18 = vld [vmem:[%s955_s7 + $0x68] sm:$0xff] }
  0x3c   :  { %603 = vmatprep.subr.bf16.mxu1 %v727_v1  ;;  %624 = vmatprep.subr.bf16.mxu0 %v727_v1  ;;  %v655_v19 = vpack.c.bf16 %v340_v18, %v339_v17 }
  0x3f   :  { %605 = vmatpush3.bf16.msra.mxu1 %v604_v21  ;;  %626 = vmatpush3.bf16.msra.mxu0 %v625_v42  ;;  %v342_v21 = vld [vmem:[%s955_s7 + $0x78] sm:$0xff] }
  0x40   :  { %606 = vmatprep.subr.bf16.mxu1 %v727_v1  ;;  %627 = vmatprep.subr.bf16.mxu0 %v727_v1  ;;  %v658_v22 = vpack.c.bf16 %v342_v21, %v341_v20 }
  0x43   :  { %608 = vmatpush3.bf16.msra.mxu1 %v607_v24  ;;  %629 = vmatpush3.bf16.msra.mxu0 %v628_v50 }
  0x44   :  { %609 = vmatprep.subr.bf16.mxu1 %v727_v1  ;;  %630 = vmatprep.subr.bf16.mxu0 %v727_v1 }
  0x47   :  { %611 = vmatpush3.bf16.msra.mxu1 %v610_v27  ;;  %632 = vmatpush3.bf16.msra.mxu0 %v631_v53 }
  0x48   :  { %636 = vmatprep.subr.bf16.mxu1 %v727_v1  ;;  %633 = vmatprep.subr.bf16.mxu0 %v727_v1 }
  0x4b   :  { %635 = vmatpush3.bf16.msra.mxu0 %v634_v56 }
  0xfc   :  { %v134_v44 = vpop.f32.mrb[0].mxu0 }
  0xfd   :  { %v135_v45 = vadd.f32 %v421_v43, %v134_v44  ;;  %v482_v46 = vpop.f32.mrb[1].mxu0 }
  0xff   :  { %667 = vtanh.f32 %v135_v45 }
 0x109   :  { %v668_v47 = vpop.eup %667 }
 0x10a   :  { %516 = vmatmul.mubr.f32.vlgmr.msra.gmra.mrb[0].mxu1 %v668_v47 }
 0x10b   :  { %585 = vmatprep.mubr.msk.f32.mxu1 %vm726_vm0, %v725_v0  ;;  %638 = vmatpush3.bf16.msra.mxu1 %v637_v60  ;;  %v332_v0 = vld [vmem:[%s955_s7 + $0x28] sm:$0xff] }
 0x10c   :  { %639 = vmatprep.subr.bf16.mxu1 %v727_v1  ;;  %v643_v2 = vpack.c.bf16 %v332_v0, %v331_v63 }
 0x10f   :  { %641 = vmatpush3.bf16.msra.mxu1 %v640_v62 }
 0x110   :  { %642 = vmatprep.subr.bf16.mxu1 %v727_v1 }
 0x113   :  { %644 = vmatpush3.bf16.msra.mxu1 %v643_v2 }
 0x114   :  { %645 = vmatprep.subr.bf16.mxu1 %v727_v1 }
 0x117   :  { %647 = vmatpush3.bf16.msra.mxu1 %v646_v5 }
 0x118   :  { %648 = vmatprep.subr.bf16.mxu1 %v727_v1 }
 0x11b   :  { %650 = vmatpush3.bf16.msra.mxu1 %v649_v8 }
 0x11c   :  { %651 = vmatprep.subr.bf16.mxu1 %v727_v1 }
 0x11f   :  { %653 = vmatpush3.bf16.msra.mxu1 %v652_v16 }
 0x120   :  { %654 = vmatprep.subr.bf16.mxu1 %v727_v1 }
 0x123   :  { %656 = vmatpush3.bf16.msra.mxu1 %v655_v19 }
 0x124   :  { %657 = vmatprep.subr.bf16.mxu1 %v727_v1 }
 0x127   :  { %659 = vmatpush3.bf16.msra.mxu1 %v658_v22 }
 0x1dd   :  { %v228_v10 = vpop.f32.mrb[0].mxu1 }
 0x1de   :  { %v229_v11 = vadd.f32 %v423_v9, %v228_v10  ;;  %v517_v12 = vpop.f32.mrb[1].mxu1 }
 0x1e0   :  { %669 = vtanh.f32 %v229_v11 }
 0x1ea   :  { %v670_v13 = vpop.eup %669 }
 0x1eb   :  { %551 = vmatmul.mubr.f32.vlgmr.msra.gmra.mrb[2].mxu0 %v670_v13 }
 0x2be   :  { %v322_v24 = vpop.f32.mrb[2].mxu0 }
 0x2bf   :  { %v323_v25 = vadd.f32 %v424_v23, %v322_v24  ;;  %v552_v26 = vpop.f32.mrb[3].mxu0 }
 0x2c1   :  { %671 = vtanh.f32 %v323_v25 }
 0x2cb   :  { %v672_v27 = vpop.eup %671 }
 0x2cc   :  { %586 = vmatmul.mubr.f32.vlgmr.msra.gmra.mrb[2].mxu1 %v672_v27 }
 0x39f   :  { %v409_v28 = vpop.f32.mrb[2].mxu1 }
 0x3a0   :  { %414 = vst.msk [vmem:[%s956_s8] sm:$0xff] %vm413_vm2, %v409_v28  ;;  %v587_v29 = vpop.f32.mrb[3].mxu1 }
 0x3a1   :  { %419 = vsyncpa [#allocation3], 1 }
 0x3a2   :  { %420 = vsyncpa [#allocation5], 1 }

</bundles_post_ra>
